<compile_context>
chip_gen: v7x
topology: tpu7x:2x2x1
jax: 0.10.0
libtpu: 0.0.40
codegen_flags: <defaults>
</compile_context>

<pallas_src>
import functools

import jax
import jax.numpy as jnp
from jax import lax
from jax.experimental import pallas as pl
from jax.experimental.pallas import tpu as pltpu

H1 = 20   # lin1a / lin1b out_features
KB = 16   # lin1b in_features


def _round_up(n, m):
    return ((n + m - 1) // m) * m


def _time_transfer_kernel(x_ref, b_ref, w1a_ref, w1b_ref, bias1_ref, w2_ref, b2_ref,
                          out_ref):
    # x_ref:    (1, T)    lane-dense batch tile (lanes = timesteps)
    # b_ref:    (T, 16)   batch-major b tile, streamed as-is from HBM (no wrapper transpose)
    # w1a_ref:  (20, 1)   lin1a.weight (column)
    # w1b_ref:  (20, 16)  lin1b.weight
    # bias1_ref:(20, 1)   lin1a.bias + lin1b.bias (pre-folded in the wrapper)
    # w2_ref:   (20, 1)   lin2.weight^T (column)
    # b2_ref:   (1, 1)    lin2.bias
    # out_ref:  (1, T)    lane-dense output

    # lin1a (K=1): pure VPU broadcast outer product (20,1) * (1,T) -> (20,T).
    h = w1a_ref[...] * x_ref[...]

    # lin1b (16 -> 20) on the MXU as an A @ B^T contraction:
    #   (20,16) x (T,16), contracting dim 1 of both -> (20, T).
    # Keeps everything lane-dense without any wrapper-side transpose of b.
    h = h + lax.dot_general(
        w1b_ref[...], b_ref[...],
        dimension_numbers=(((1,), (1,)), ((), ())),
        preferred_element_type=jnp.float32)

    # Fused bias (b1a + b1b), broadcast over lanes.
    h = h + bias1_ref[...]

    # sigmoid(z) = 0.5 * (tanh(0.5*z) + 1): one EUP transcendental per element.
    xa = 0.5 * (jnp.tanh(0.5 * h) + 1.0)

    # lin2 (20 -> 1): VPU multiply + sublane (XLU) reduce; output stays (1, T).
    out = jnp.sum(w2_ref[...] * xa, axis=0, keepdims=True) + b2_ref[...]
    out_ref[...] = out.astype(out_ref.dtype)


def _pick_tile(n, max_tile):
    """Lane-dense tile width over the batch/time axis (always (8,128)-legal)."""
    if n <= min(max_tile, 1024):
        return n  # single block; block dims equal the full array dims (always legal)
    # Prefer big tiles (per-step overhead ~0.35us) but keep >= ~8 grid steps so both
    # v7x TensorCores get work; always a multiple of 128.
    t = max(1024, _round_up(pl.cdiv(n, 8), 128))
    t = min(t, _round_up(max_tile, 128))
    return max(t, 128)


def time_transfer_pallas(x, b, params, tile_n=16384):
    """x: (N, 1) f32, b: (N, 16) f32 -> (N, 1) f32 (same semantics as the torch module)."""
    w1a, b1a, w1b, b1b, w2, b2 = params   # torch shapes: (20,1),(20,),(20,16),(20,),(1,20),(1,)
    N = x.shape[0]

    t = _pick_tile(N, tile_n)
    grid = (pl.cdiv(N, t),)

    # Only free layout plumbing here: contiguous reshapes for x / out, no transpose,
    # no jnp.pad (Pallas pads tail-block reads and masks tail writes).
    x_row = x.astype(jnp.float32).reshape(1, N)                 # (1, N)
    b_f32 = b.astype(jnp.float32)                               # (N, 16), untouched layout
    w1a_col = w1a.reshape(H1, 1).astype(jnp.float32)            # (20, 1)
    w1b_m = w1b.astype(jnp.float32)                             # (20, 16)
    bias1 = (b1a + b1b).reshape(H1, 1).astype(jnp.float32)      # (20, 1)
    w2_col = w2.reshape(1, H1).T.astype(jnp.float32)            # (20, 1)
    b2_2d = b2.reshape(1, 1).astype(jnp.float32)                # (1, 1)
    # NOTE: if upstream already produces bf16 `b`, stream it as bf16 and upcast in-kernel
    # (b is ~64 of 72 B/element); do NOT add a standalone astype(bf16) pass here.

    resident = lambda i: (0, 0)   # weights / biases: DMA'd once, stay resident in VMEM

    # Roofline hint for XLA's scheduler (per element: 4B x + 64B b + 4B out).
    cost = pl.CostEstimate(flops=800 * N, transcendentals=20 * N,
                           bytes_accessed=72 * N)

    out_row = pl.pallas_call(
        _time_transfer_kernel,
        out_shape=jax.ShapeDtypeStruct((1, N), jnp.float32),
        grid_spec=pltpu.PrefetchScalarGridSpec(
            num_scalar_prefetch=0,
            grid=grid,
            in_specs=[
                pl.BlockSpec((1, t), lambda i: (0, i)),      # x tile (streamed)
                pl.BlockSpec((t, KB), lambda i: (i, 0)),     # b tile (streamed, batch-major)
                pl.BlockSpec((H1, 1), resident),             # w1a
                pl.BlockSpec((H1, KB), resident),            # w1b
                pl.BlockSpec((H1, 1), resident),             # fused bias1
                pl.BlockSpec((H1, 1), resident),             # w2 (column)
                pl.BlockSpec((1, 1), resident),              # b2
            ],
            out_specs=pl.BlockSpec((1, t), lambda i: (0, i)),
        ),
        compiler_params=pltpu.CompilerParams(
            # shards N-tiles across TensorCores on v7x; no effect on v5e/v6e
            dimension_semantics=("parallel",),
            # (t,16) f32 b-blocks lane-pad to 128 in VMEM: ~8 MiB/buffer at t=16384,
            # x2 double-buffering ~16 MiB + ~8 MiB intermediates -> ~25 MiB; 40 MiB
            # gives compile headroom and is safe even on v7x's 64 MiB physical VMEM.
            vmem_limit_bytes=40 * 1024 * 1024,
        ),
        cost_estimate=cost,
    )(x_row, b_f32, w1a_col, w1b_m, bias1, w2_col, b2_2d)

    return out_row.reshape(N, 1)    # free reshape back to the torch (N, 1) layout


def init_params(key):
    """Deterministic init matching torch.nn.Linear parameter shapes."""
    k = jax.random.split(key, 6)

    def uniform(kk, shape, fan_in):
        bound = 1.0 / jnp.sqrt(jnp.float32(fan_in))
        return jax.random.uniform(kk, shape, jnp.float32, -bound, bound)

    w1a = uniform(k[0], (20, 1), 1)     # lin1a.weight
    b1a = uniform(k[1], (20,), 1)       # lin1a.bias
    w1b = uniform(k[2], (20, 16), 16)   # lin1b.weight
    b1b = uniform(k[3], (20,), 16)      # lin1b.bias
    w2 = uniform(k[4], (1, 20), 20)     # lin2.weight
    b2 = uniform(k[5], (1,), 20)        # lin2.bias
    return (w1a, b1a, w1b, b1b, w2, b2)


def time_transfer_ref(x, b, params):
    """Pure-JAX reference mirroring the torch module exactly."""
    w1a, b1a, w1b, b1b, w2, b2 = params
    x1a = x @ w1a.T + b1a
    x1b = b @ w1b.T + b1b
    xa = jax.nn.sigmoid(x1a + x1b)
    return xa @ w2.T + b2


if __name__ == "__main__":
    key = jax.random.PRNGKey(0)
    kx, kb, kp = jax.random.split(key, 3)

    N = 200  # small batch of timesteps (exercises a partial tail block when tiled)
    x = jax.random.normal(kx, (N, 1), jnp.float32)
    b = jax.random.normal(kb, (N, 16), jnp.float32)
    params = init_params(kp)

    fn = jax.jit(time_transfer_pallas, static_argnums=(3,))
    ref = time_transfer_ref(x, b, params)

    # Multi-step grid path (tile=128 -> 2 grid steps, masked tail writes).
    out_tiled = jax.block_until_ready(fn(x, b, params, 128))
    # Default path (small N collapses to a single full-array block).
    out_full = jax.block_until_ready(fn(x, b, params, 16384))

    assert out_tiled.shape == (N, 1) and out_full.shape == (N, 1)
    assert jnp.allclose(out_tiled, ref, atol=1e-5, rtol=1e-5)
    assert jnp.allclose(out_full, ref, atol=1e-5, rtol=1e-5)

    print("KERNEL_OK")
</pallas_src>

<mosaic_0001>
module attributes {stable_mosaic.version = 11 : i64} {
  func.func @_time_transfer_kernel(%arg0: i32, %arg1: memref<1x128xf32, #tpu.memory_space<vmem>>, %arg2: memref<128x16xf32, #tpu.memory_space<vmem>>, %arg3: memref<20x1xf32, #tpu.memory_space<vmem>>, %arg4: memref<20x16xf32, #tpu.memory_space<vmem>>, %arg5: memref<20x1xf32, #tpu.memory_space<vmem>>, %arg6: memref<20x1xf32, #tpu.memory_space<vmem>>, %arg7: memref<1x1xf32, #tpu.memory_space<vmem>>, %arg8: memref<1x128xf32, #tpu.memory_space<vmem>>) attributes {dimension_semantics = [#tpu.dimension_semantics<parallel>], iteration_bounds = array<i64: 2>, scalar_prefetch = 0 : i64, scratch_operands = 0 : i64, tpu.core_type = #tpu.core_type<tc>, window_params = [{transform_indices = @transform_0, window_bounds = array<i64: 1, 128>}, {transform_indices = @transform_1, window_bounds = array<i64: 128, 16>}, {pipeline_mode = #tpu.pipeline_mode<synchronous>, transform_indices = @transform_2, window_bounds = array<i64: 20, 1>}, {pipeline_mode = #tpu.pipeline_mode<synchronous>, transform_indices = @transform_3, window_bounds = array<i64: 20, 16>}, {pipeline_mode = #tpu.pipeline_mode<synchronous>, transform_indices = @transform_4, window_bounds = array<i64: 20, 1>}, {pipeline_mode = #tpu.pipeline_mode<synchronous>, transform_indices = @transform_5, window_bounds = array<i64: 20, 1>}, {pipeline_mode = #tpu.pipeline_mode<synchronous>, transform_indices = @transform_6, window_bounds = array<i64: 1, 1>}, {transform_indices = @transform_7, window_bounds = array<i64: 1, 128>}]} {
    %c0 = arith.constant 0 : index
    %c0_0 = arith.constant 0 : index
    %0 = vector.load %arg3[%c0, %c0_0] : memref<20x1xf32, #tpu.memory_space<vmem>>, vector<20x1xf32>
    %c0_1 = arith.constant 0 : index
    %c0_2 = arith.constant 0 : index
    %1 = vector.load %arg1[%c0_1, %c0_2] : memref<1x128xf32, #tpu.memory_space<vmem>>, vector<1x128xf32>
    %2 = vector.broadcast %0 : vector<20x1xf32> to vector<20x128xf32>
    %3 = vector.broadcast %1 : vector<1x128xf32> to vector<20x128xf32>
    %4 = arith.mulf %2, %3 : vector<20x128xf32>
    %c0_3 = arith.constant 0 : index
    %c0_4 = arith.constant 0 : index
    %5 = vector.load %arg4[%c0_3, %c0_4] : memref<20x16xf32, #tpu.memory_space<vmem>>, vector<20x16xf32>
    %c0_5 = arith.constant 0 : index
    %c0_6 = arith.constant 0 : index
    %6 = vector.load %arg2[%c0_5, %c0_6] : memref<128x16xf32, #tpu.memory_space<vmem>>, vector<128x16xf32>
    %cst = arith.constant dense<0.000000e+00> : vector<20x128xf32>
    %7 = tpu.matmul %5, %6, %cst {dimension_numbers = #tpu.dot_dimension_numbers<[1], [1], [0], [0], [0, 0, 1, 0], [], []>} : vector<20x16xf32>, vector<128x16xf32>, vector<20x128xf32> -> vector<20x128xf32>
    %8 = arith.addf %4, %7 : vector<20x128xf32>
    %c0_7 = arith.constant 0 : index
    %c0_8 = arith.constant 0 : index
    %9 = vector.load %arg5[%c0_7, %c0_8] : memref<20x1xf32, #tpu.memory_space<vmem>>, vector<20x1xf32>
    %10 = vector.broadcast %9 : vector<20x1xf32> to vector<20x128xf32>
    %11 = arith.addf %8, %10 : vector<20x128xf32>
    %cst_9 = arith.constant 5.000000e-01 : f32
    %12 = vector.broadcast %cst_9 : f32 to vector<20x128xf32>
    %13 = arith.mulf %12, %11 : vector<20x128xf32>
    %14 = math.tanh %13 : vector<20x128xf32>
    %cst_10 = arith.constant 1.000000e+00 : f32
    %15 = vector.broadcast %cst_10 : f32 to vector<20x128xf32>
    %16 = arith.addf %14, %15 : vector<20x128xf32>
    %cst_11 = arith.constant 5.000000e-01 : f32
    %17 = vector.broadcast %cst_11 : f32 to vector<20x128xf32>
    %18 = arith.mulf %17, %16 : vector<20x128xf32>
    %c0_12 = arith.constant 0 : index
    %c0_13 = arith.constant 0 : index
    %19 = vector.load %arg6[%c0_12, %c0_13] : memref<20x1xf32, #tpu.memory_space<vmem>>, vector<20x1xf32>
    %20 = vector.broadcast %19 : vector<20x1xf32> to vector<20x128xf32>
    %21 = arith.mulf %20, %18 : vector<20x128xf32>
    %cst_14 = arith.constant dense<0.000000e+00> : vector<128xf32>
    %22 = vector.multi_reduction <add>, %21, %cst_14 [0] : vector<20x128xf32> to vector<128xf32>
    %23 = vector.shape_cast %22 : vector<128xf32> to vector<1x128xf32>
    %c0_15 = arith.constant 0 : index
    %c0_16 = arith.constant 0 : index
    %24 = vector.load %arg7[%c0_15, %c0_16] : memref<1x1xf32, #tpu.memory_space<vmem>>, vector<1x1xf32>
    %25 = vector.broadcast %24 : vector<1x1xf32> to vector<1x128xf32>
    %26 = arith.addf %23, %25 : vector<1x128xf32>
    %c0_17 = arith.constant 0 : index
    %c0_18 = arith.constant 0 : index
    %27 = vector.load %arg8[%c0_17, %c0_18] : memref<1x128xf32, #tpu.memory_space<vmem>>, vector<1x128xf32>
    tpu.vector_store %arg8[%c0_17, %c0_18], %26 {strides = array<i32>} : memref<1x128xf32, #tpu.memory_space<vmem>>, vector<1x128xf32>,
    return
  }
  func.func @transform_0(%arg0: i32) -> (i32, i32) {
    %c0_i32 = arith.constant 0 : i32
    %c0_i32_0 = arith.constant 0 : i32
    return %c0_i32, %arg0 : i32, i32
  }
  func.func @transform_1(%arg0: i32) -> (i32, i32) {
    %c0_i32 = arith.constant 0 : i32
    %c0_i32_0 = arith.constant 0 : i32
    return %arg0, %c0_i32 : i32, i32
  }
  func.func @transform_2(%arg0: i32) -> (i32, i32) {
    %c0_i32 = arith.constant 0 : i32
    %c0_i32_0 = arith.constant 0 : i32
    %c0_i32_1 = arith.constant 0 : i32
    return %c0_i32, %c0_i32_0 : i32, i32
  }
  func.func @transform_3(%arg0: i32) -> (i32, i32) {
    %c0_i32 = arith.constant 0 : i32
    %c0_i32_0 = arith.constant 0 : i32
    %c0_i32_1 = arith.constant 0 : i32
    return %c0_i32, %c0_i32_0 : i32, i32
  }
  func.func @transform_4(%arg0: i32) -> (i32, i32) {
    %c0_i32 = arith.constant 0 : i32
    %c0_i32_0 = arith.constant 0 : i32
    %c0_i32_1 = arith.constant 0 : i32
    return %c0_i32, %c0_i32_0 : i32, i32
  }
  func.func @transform_5(%arg0: i32) -> (i32, i32) {
    %c0_i32 = arith.constant 0 : i32
    %c0_i32_0 = arith.constant 0 : i32
    %c0_i32_1 = arith.constant 0 : i32
    return %c0_i32, %c0_i32_0 : i32, i32
  }
  func.func @transform_6(%arg0: i32) -> (i32, i32) {
    %c0_i32 = arith.constant 0 : i32
    %c0_i32_0 = arith.constant 0 : i32
    %c0_i32_1 = arith.constant 0 : i32
    return %c0_i32, %c0_i32_0 : i32, i32
  }
  func.func @transform_7(%arg0: i32) -> (i32, i32) {
    %c0_i32 = arith.constant 0 : i32
    %c0_i32_0 = arith.constant 0 : i32
    return %c0_i32, %arg0 : i32, i32
  }
}

</mosaic_0001>

<bundles_post_ra>
// kernel: time_transfer_pallas.1
= control target key start
LH: loop header
LB: loop body
LE: loop exit
PB: predicated region body
PF: predicated region fallthrough
CT: control target
= control target key end

     0   :  { %s1180_s0 = inlined_call_operand.vmem [shape: f32[1,200], index: 0, kind: input, shape index: {}]   ;;  %s1181_s1 = inlined_call_operand.vmem [shape: f32[200,16], index: 1, kind: input, shape index: {}]   ;;  %s1182_s2 = inlined_call_operand.vmem [shape: f32[20,1], index: 2, kind: input, shape index: {}]   ;;  %s1183_s3 = inlined_call_operand.vmem [shape: f32[20,16], index: 3, kind: input, shape index: {}]   ;;  %s1184_s4 = inlined_call_operand.vmem [shape: f32[20,1], index: 4, kind: input, shape index: {}]   ;;  %s1185_s5 = inlined_call_operand.vmem [shape: f32[20,1], index: 5, kind: input, shape index: {}]   ;;  %s1186_s6 = inlined_call_operand.<no memory space> [shape: f32[1,1], index: 6, kind: input, shape index: {}]   ;;  %s1187_s7 = inlined_call_operand.hbm [shape: f32[1,200], index: 7, kind: output, shape index: {}]  }
   0x1   :  { %v12_v0 = vstv %s1186_s6 }
   0x2   :  { %13 = vst [vmem:[#allocation2] sm:$0x1] %v12_v0 }
   0x3   :  { %14 = vsyncpa [#allocation4], 0 }
   0x4   :  { %16 = vsyncpa [#allocation4 + $0x1], 0  ;;  %s955_s26 = smov 0   ;;  %s957_s27 = smov 0  }
   0x5   :  { %s959_s28 = smov 0   ;;  %s961_s29 = smov 0  }
   0x6 LB: > { %s976_s6 = sadd.s32 4294967295, %s905_s29   ;;  %s655_s30 = sadd.s32 4294967294, %s905_s29   ;;  %s905_s29 = sphi %s961_s29, %s1195_s29   ;;  %s901_s28 = sphi %s959_s28, %s1194_s28   ;;  %s897_s27 = sphi %s957_s27, %s1193_s27   ;;  %s893_s26 = sphi %s955_s26, %s1192_s26  }
   0x7   : > { %s980_s8 = sadd.s32 1, %s905_s29   ;;  %s186_s9 = sadd.s32 1, %s901_s28 }
   0x8   : > { %s183_s10 = ssub.s32 %s905_s29, %s980_s8  ;;  %p196_p0 = scmp.ne.s32.totalorder %s901_s28, %s897_s27 }
   0x9   : > { %p184_p1 = scmp.eq.s32.totalorder %s183_s10, 0  ;;  %p197_p2 = scmp.eq.s32.totalorder %s976_s6, 1 }
   0xa   : > { %p202_p3 = scmp.ne.s32.totalorder %s897_s27, %s893_s26  ;;  %p203_p4 = scmp.eq.s32.totalorder %s655_s30, 1 }
   0xb   : > { %s991_s11 = scalar_select %p184_p1, %s901_s28, %s186_s9  }
   0xc   : > { %p993_p5 = por %p197_p2, %p196_p0  ;;  %p997_p6 = por %p203_p4, %p202_p3 }
   0xd   : > { %p658_p7 = scmp.ge.s32.totalorder %s905_s29, 1  ;;  %p259_p8 = scmp.lt.s32.totalorder %s905_s29, 3 }
   0xf   : > { %p260_p9 = pnand %p658_p7, %p259_p8 }
  0x10   : > { %s1004_s14 = sshll.u32 (!%p260_p9), %s976_s6, 4  ;;  %v907_v1 = vmov (!%p260_p9), 0.0|0.0   ;;  %vm908_vm0 = vmmov (!%p260_p9), 0   ;;  %v909_v2 = vmov (!%p260_p9), 0.0   ;;  %v314_v3 = vld [vmem:[%s1182_s2] sm:$0xff] (!%p260_p9)  ;;  %v910_v5 = vmov (!%p260_p9), 0  }
  0x11   : > { %263 = sbr.rel (%p260_p9) target bundleno = 364 (0x16c), region = 48  ;;  %744 = vmatprep.subr.bf16.mxu0 (!%p260_p9), %v907_v1  ;;  %776 = vmatprep.subr.bf16.mxu1 (!%p260_p9), %v907_v1  ;;  %p305_p10 = scmp.lt.s32.totalorder (!%p260_p9), %s1004_s14, 24  ;;  %v316_v4 = vld [vmem:[%s1182_s2 + $0x10] sm:$0xf] (!%p260_p9)  ;;  %vm361_vm1 = vcmask (!%p260_p9), 130048   ;;  %v315_v6 = vld [vmem:[%s1182_s2 + $0x8] sm:$0xff] (!%p260_p9) }
  0x12   : > { %735 = vmatprep.mubr.msk.f32.mxu0 (!%p260_p9), %vm908_vm0, %v909_v2  ;;  %738 = vmatprep.mubr.msk.f32.mxu1 (!%p260_p9), %vm908_vm0, %v909_v2  ;;  %v502_v7 = vld [vmem:[%s1184_s4] sm:$0xff] (!%p260_p9)  ;;  %vm1035_vm2 = vmpackc.low (!%p260_p9), %vm361_vm1, %vm361_vm1  ;;  %v503_v12 = vld [vmem:[%s1184_s4 + $0x8] sm:$0xff] (!%p260_p9)  ;;  %p297_p11 = scmp.lt.s32.totalorder (!%p260_p9), %s976_s6, 1  ;;  %vm557_vm3 = vcmask (!%p260_p9), 1043456   ;;  %s1138_s23 = scalar_lea.hbm (!%p260_p9), %s1187_s7, %s1004_s14 }
  0x13   : > { %835 = vset.pattern.permute.xlu0 (!%p260_p9), %v910_v5  ;;  %836 = vset.pattern.permute.xlu1 (!%p260_p9), %v910_v5  ;;  %v504_v13 = vld [vmem:[%s1184_s4 + $0x10] sm:$0xf] (!%p260_p9)  ;;  %v535_v16 = vld [vmem:[%s1185_s5] sm:$0xff] (!%p260_p9)  ;;  %v536_v17 = vld [vmem:[%s1185_s5 + $0x8] sm:$0xff] (!%p260_p9)  ;;  %s911_s30 = smov (!%p260_p9), [#allocation3]  }
  0x14   : > { %320 = vperm.xlu0 (!%p260_p9), %835, %v314_v3   ;;  %330 = vperm.xlu1 (!%p260_p9), %836, %v316_v4   ;;  %v537_v19 = vld [vmem:[%s1185_s5 + $0x10] sm:$0xf] (!%p260_p9)  ;;  %v566_v20 = vld [vmem:[#allocation2] sm:$0x1] (!%p260_p9)  ;;  %v343_v40 = vld [vmem:[%s1183_s3 + $0x8] sm:$0xff] (!%p260_p9)  ;;  %s847_s10 = sshll.u32 (!%p260_p9), %s911_s30, 4  ;;  %s848_s10 = int_to_ptr.vmem [resolvable:$false] %s847_s10 }
  0x15   : > { %v342_v39 = vld [vmem:[%s1183_s3] sm:$0xff] (!%p260_p9)  ;;  %v344_v41 = vld [vmem:[%s1183_s3 + $0x10] sm:$0xf] (!%p260_p9) }
  0x18   : > { %s306_s19 = scalar_select %p305_p10, %s1004_s14, 24  ;;  %325 = vperm.xlu0 %835, %v315_v6   ;;  %507 = vperm.xlu1 %836, %v502_v7  }
  0x19   : > { %s1197_s6 = smov (!%p297_p11, %s976_s6), 1 }
  0x1a   : > { %s660_s20 = sshll.u32 %s306_s19, 3  ;;  %s299_s18 = scalar_lea.vmem %s1180_s0, %s1197_s6 }
  0x1b   : > { %s1029_s9 = scalar_lea.vmem %s1181_s1, %s660_s20  ;;  %v661_v44 = vld [vmem:[%s299_s18] ss:$0 sm:$0xff]  ;;  %s295_s6 = sand.u32 1, %s897_s27  }
  0x1c   : > { %v345_v8 = vld [vmem:[%s1029_s9] sm:$0xff]  ;;  %v346_v9 = vld [vmem:[%s1029_s9 + $0x8] sm:$0xff]  ;;  %v347_v14 = vld [vmem:[%s1029_s9 + $0x10] sm:$0xff]  ;;  %512 = vperm.xlu0 %835, %v503_v12   ;;  %517 = vperm.xlu1 %836, %v504_v13   ;;  %s296_s19 = scalar_lea.vmem [#allocation3], %s295_s6  ;;  %s579_s24 = scalar_lea.sflag [#allocation4], %s295_s6 }
  0x1d   : > { %v745_v11 = vpack.c.bf16 %v346_v9, %v345_v8  ;;  %v348_v15 = vld [vmem:[%s1029_s9 + $0x18] sm:$0xff]  ;;  %v349_v21 = vld [vmem:[%s1029_s9 + $0x20] sm:$0xff]  ;;  %v350_v22 = vld [vmem:[%s1029_s9 + $0x28] sm:$0xff]  ;;  %s591_s20 = sshll.u32 %s296_s19, 4  ;;  %s1140_s20 = int_to_ptr.vmem [resolvable:$true] %s591_s20 }
  0x1e   : > { %v749_v18 = vpack.c.bf16 %v348_v15, %v347_v14  ;;  %v753_v23 = vpack.c.bf16 %v350_v22, %v349_v21  ;;  %v351_v24 = vld [vmem:[%s1029_s9 + $0x30] sm:$0xff]  ;;  %v352_v25 = vld [vmem:[%s1029_s9 + $0x38] sm:$0xff]  ;;  %v353_v27 = vld [vmem:[%s1029_s9 + $0x40] sm:$0xff]  ;;  %s843_s25 = scalar_lea.vmem %s1140_s20, 16  ;;  %p850_p1 = scmp.lt.s32.totalorder %s1140_s20, %s848_s10 }
  0x1f   : > { %747 = vmatpush3.bf16.xpose.msk.msra.mxu0 %vm1035_vm2, %v745_v11  ;;  %784 = vmatpush3.bf16.xpose.msk.msra.mxu1 %vm1035_vm2, %v745_v11  ;;  %v757_v26 = vpack.c.bf16 %v352_v25, %v351_v24  ;;  %v354_v28 = vld [vmem:[%s1029_s9 + $0x48] sm:$0xff]  ;;  %v355_v30 = vld [vmem:[%s1029_s9 + $0x50] sm:$0xff]  ;;  %v356_v31 = vld [vmem:[%s1029_s9 + $0x58] sm:$0xff]  ;;  %p844_p12 = scmp.ne.s32.totalorder %s1140_s20, %s843_s25 }
  0x20   : > { %748 = vmatprep.subr.bf16.mxu0 %v907_v1  ;;  %777 = vmatprep.subr.bf16.mxu1 %v907_v1  ;;  %v761_v29 = vpack.c.bf16 %v354_v28, %v353_v27  ;;  %v765_v32 = vpack.c.bf16 %v356_v31, %v355_v30  ;;  %v357_v33 = vld [vmem:[%s1029_s9 + $0x60] sm:$0xff]  ;;  %v358_v34 = vld [vmem:[%s1029_s9 + $0x68] sm:$0xff]  ;;  %v359_v36 = vld [vmem:[%s1029_s9 + $0x70] sm:$0xff] }
  0x21   : > { %540 = vperm.xlu0 %835, %v535_v16   ;;  %545 = vperm.xlu1 %836, %v536_v17   ;;  %v769_v35 = vpack.c.bf16 %v358_v34, %v357_v33  ;;  %v360_v37 = vld [vmem:[%s1029_s9 + $0x78] sm:$0xff]  ;;  %p845_p13 = pnand %p844_p12, %p993_p5  ;;  %s849_s9 = scalar_lea.vmem %s848_s10, 32 }
  0x22   : > { %v773_v38 = vpack.c.bf16 %v360_v37, %v359_v36  ;;  %p851_p2 = scmp.lt.s32.totalorder %s849_s9, %s843_s25 }
  0x23   : > { %p846_p0 = pneg %p845_p13 }
  0x24   : > { %p852_p3 = por %p851_p2, %p850_p1 }
  0x25   : > { %550 = vperm.xlu0 %835, %v537_v19   ;;  %569 = vperm.xlu1 %836, %v566_v20   ;;  %v572_v20 = vlaneseq }
  0x26   : > { %p853_p4 = pnand %p852_p3, %p846_p0 }
  0x27   : > { %751 = vmatpush3.bf16.xpose.msk.msra.mxu0 %vm1035_vm2, %v749_v18  ;;  %785 = vmatpush3.bf16.xpose.msk.msra.mxu1 %vm1035_vm2, %v749_v18 }
  0x28   : > { %752 = vmatprep.subr.bf16.mxu0 %v907_v1  ;;  %778 = vmatprep.subr.bf16.mxu1 %v907_v1 }
  0x2f   : > { %755 = vmatpush3.bf16.xpose.msk.msra.mxu0 %vm1035_vm2, %v753_v23  ;;  %786 = vmatpush3.bf16.xpose.msk.msra.mxu1 %vm1035_vm2, %v753_v23  ;;  %v573_v23 = vshrl.u32 %v572_v20, 7 }
  0x30   : > { %756 = vmatprep.subr.bf16.mxu0 %v907_v1  ;;  %779 = vmatprep.subr.bf16.mxu1 %v907_v1 }
  0x37   : > { %759 = vmatpush3.bf16.xpose.msk.msra.mxu0 %vm1035_vm2, %v757_v26  ;;  %787 = vmatpush3.bf16.xpose.msk.msra.mxu1 %vm1035_vm2, %v757_v26  ;;  %v574_v26 = vsub.s32 0, %v573_v23 }
  0x38   : > { %760 = vmatprep.subr.bf16.mxu0 %v907_v1  ;;  %780 = vmatprep.subr.bf16.mxu1 %v907_v1 }
  0x3f   : > { %763 = vmatpush3.bf16.xpose.msk.msra.mxu0 %vm1035_vm2, %v761_v29  ;;  %788 = vmatpush3.bf16.xpose.msk.msra.mxu1 %vm1035_vm2, %v761_v29 }
  0x40   : > { %764 = vmatprep.subr.bf16.mxu0 %v907_v1  ;;  %781 = vmatprep.subr.bf16.mxu1 %v907_v1 }
  0x47   : > { %767 = vmatpush3.bf16.xpose.msk.msra.mxu0 %vm1035_vm2, %v765_v32  ;;  %789 = vmatpush3.bf16.xpose.msk.msra.mxu1 %vm1035_vm2, %v765_v32 }
  0x48   : > { %768 = vmatprep.subr.bf16.mxu0 %v907_v1  ;;  %782 = vmatprep.subr.bf16.mxu1 %v907_v1 }
  0x4f   : > { %771 = vmatpush3.bf16.xpose.msk.msra.mxu0 %vm1035_vm2, %v769_v35  ;;  %790 = vmatpush3.bf16.xpose.msk.msra.mxu1 %vm1035_vm2, %v769_v35 }
  0x50   : > { %772 = vmatprep.subr.bf16.mxu0 %v907_v1  ;;  %783 = vmatprep.subr.bf16.mxu1 %v907_v1 }
  0x57   : > { %775 = vmatpush3.bf16.xpose.msk.msra.mxu0 %vm1035_vm2, %v773_v38  ;;  %791 = vmatpush3.bf16.xpose.msk.msra.mxu1 %vm1035_vm2, %v773_v38 }
  0x5e   : > { %736 = vmatmul.mubr.msk.f32.vlgmr.msra.gmra.mrb[0].mxu0 %vm361_vm1, %v342_v39  ;;  %739 = vmatmul.mubr.msk.f32.vlgmr.msra.gmra.mrb[0].mxu1 %vm361_vm1, %v343_v40 }
  0x5f   : > { %741 = vmatprep.mubr.msk.f32.mxu1 %vm908_vm0, %v909_v2 }
  0x62   : > { %742 = vmatmul.mubr.msk.f32.gmra.mrb[2].mxu1 %vm361_vm1, %v344_v41 }
  0x93   : > { %v321_v42 = vpop.permute.xlu0 %320  ;;  %v331_v43 = vpop.permute.xlu1 %330 }
  0x94   : > { %v339_v46 = vmul.f32 %v661_v44, %v321_v42  ;;  %v341_v56 = vmul.f32 %v661_v44, %v331_v43 }
  0x97   : > { %v326_v45 = vpop.permute.xlu0 %325  ;;  %v508_v48 = vpop.permute.xlu1 %507 }
  0x98   : > { %v340_v47 = vmul.f32 %v661_v44, %v326_v45 }
  0x9b   : > { %v513_v55 = vpop.permute.xlu0 %512  ;;  %v518_v0 = vpop.permute.xlu1 %517 }
  0xa0   : > { %v541_v6 = vpop.permute.xlu0 %540  ;;  %v546_v11 = vpop.permute.xlu1 %545 }
  0xa4   : > { %v551_v16 = vpop.permute.xlu0 %550  ;;  %v570_v28 = vpop.permute.xlu1 %569 }
  0xa5   : > { %v575_v30 = vrot.slane %v570_v28, %v574_v26 }
 0x131   : > { %v485_v49 = vpop.f32.mrb[0].mxu0  ;;  %v490_v50 = vpop.f32.mrb[0].mxu1 }
 0x132   : > { %v499_v51 = vadd.f32 %v485_v49, %v339_v46  ;;  %v500_v52 = vadd.f32 %v490_v50, %v340_v47  ;;  %v740_v53 = vpop.f32.mrb[1].mxu1  ;;  %v737_v54 = vpop.f32.mrb[1].mxu0 }
 0x134   : > { %v520_v57 = vadd.f32 %v508_v48, %v499_v51  ;;  %v521_v58 = vadd.f32 %v513_v55, %v500_v52 }
 0x135   : > { %v495_v59 = vpop.f32.mrb[2].mxu1 }
 0x136   : > { %v523_v60 = vmul.f32 0.5, %v520_v57  ;;  %v524_v61 = vmul.f32 0.5, %v521_v58  ;;  %v501_v62 = vadd.f32 %v495_v59, %v341_v56  ;;  %v743_v63 = vpop.f32.mrb[3].mxu1 }
 0x138   : > { %837 = vtanh.f32 %v523_v60  ;;  %v522_v1 = vadd.f32 %v518_v0, %v501_v62 }
 0x139   : > { %839 = vtanh.f32 %v524_v61 }
 0x13a   : > { %v525_v2 = vmul.f32 0.5, %v522_v1 }
 0x13c   : > { %841 = vtanh.f32 %v525_v2 }
 0x142   : > { %v838_v3 = vpop.eup %837 }
 0x143   : > { %v840_v4 = vpop.eup %839  ;;  %v529_v5 = vadd.f32 1.0, %v838_v3 }
 0x144   : > { %v530_v7 = vadd.f32 1.0, %v840_v4 }
 0x145   : > { %v532_v8 = vmul.f32 0.5, %v529_v5 }
 0x146   : > { %v842_v9 = vpop.eup %841  ;;  %v533_v10 = vmul.f32 0.5, %v530_v7 }
 0x147   : > { %v553_v12 = vmul.f32 %v541_v6, %v532_v8  ;;  %v531_v13 = vadd.f32 1.0, %v842_v9 }
 0x148   : > { %v554_v14 = vmul.f32 %v546_v11, %v533_v10 }
 0x149   : > { %v534_v15 = vmul.f32 0.5, %v531_v13 }
 0x14a   : > { %v556_v17 = vadd.f32 %v554_v14, %v553_v12 }
 0x14b   : > { %v555_v18 = vmul.f32 %v551_v16, %v534_v15 }
 0x14d   : > { %v558_v19 = vsel %vm557_vm3, %v555_v18, 0.0 }
 0x14e   : > { %v559_v21 = vadd.f32 %v558_v19, %v556_v17 }
 0x150   : > { %v560_v22 = vrot.slane %v559_v21, 4 }
 0x152   : > { %v561_v24 = vadd.f32 %v560_v22, %v559_v21 }
 0x154   : > { %v562_v25 = vrot.slane %v561_v24, 2 }
 0x156   : > { %v563_v27 = vadd.f32 %v562_v25, %v561_v24 }
 0x158   : > { %v564_v29 = vrot.slane %v563_v27, 1 }
 0x15a   : > { %v565_v31 = vadd.f32 %v564_v29, %v563_v27 }
 0x15c   : > { %v576_v32 = vadd.f32 %v575_v30, %v565_v31 }
 0x15e   : > { %577 = vst [vmem:[%s296_s19] sm:$0x1] %v576_v32 }
 0x15f   : > { %856 = shalt.err (!%p853_p4)
}
 0x160   : > { %s857_s14 = scalar_lea.hbm %s1138_s23, 16  ;;  %s861_s17 = scalar_lea.hbm %s1187_s7, 32 }
 0x161   : > { %p858_p7 = scmp.ne.s32.totalorder %s1138_s23, %s857_s14  ;;  %p862_p10 = scmp.lt.u32.totalorder %s1138_s23, %s1187_s7 }
 0x162   : > { %p863_p11 = scmp.lt.u32.totalorder %s861_s17, %s857_s14  ;;  %p865_p13 = scmp.lt.u32.totalorder %s857_s14, %s1138_s23 }
 0x163   : > { %p859_p8 = pnand %p858_p7, %p993_p5 }
 0x164   : > { %p864_p12 = por %p863_p11, %p862_p10 }
 0x165   : > { %p860_p9 = pneg %p859_p8 }
 0x166   : > { %p866_p0 = por %p865_p13, %p864_p12 }
 0x168   : > { %p867_p1 = pnand %p866_p0, %p860_p9 }
 0x16a   : > { %870 = shalt.err (!%p867_p1)
}
 0x16b   : > { %792 = dma.vmem_to_hbm [thread:$0]  (%p993_p5), %s1140_s20, 16, %s1138_s23, %s579_s24  }
 0x16c PF: > { %p798_p2 = scmp.ge.s32.totalorder %s905_s29, 2  ;;  %s603_s19 = sand.u32 1, %s893_s26  }
 0x16d   : > { %s604_s21 = scalar_lea.sflag [#allocation4], %s603_s19 }
 0x16e   : > { %p795_p3 = pnand %p798_p2, %p997_p6 }
 0x170   : > { %888 = dma.done.wait (!%p795_p3), %s604_s21, 16  }
 0x171   : > { %890 = vsyncadd (!%p795_p3), %s604_s21, 4294967280  ;;  %p19_p4 = scmp.ge.s32.totalorder %s980_s8, 4   ;;  %s1192_s26 = smov %s897_s27 }
 0x172   : > { %s1193_s27 = smov %s901_s28  ;;  %s1194_s28 = smov %s991_s11 }
 0x173   : > { %s1195_s29 = smov %s980_s8  ;;  %21 = sbr.rel (!%p19_p4) target bundleno = 6 (0x6), region = 86 }
 0x17a   :  { %608 = vsyncpa [#allocation4], 1 }
 0x17b   :  { %610 = vsyncpa [#allocation4 + $0x1], 1 }

</bundles_post_ra>
